<compile_context>
chip_gen: v7x
topology: tpu7x:2x2x1
jax: 0.10.0
libtpu: 0.0.40
codegen_flags: <defaults>
</compile_context>

<pallas_src>
import math
from functools import partial

import numpy as np
import jax
import jax.numpy as jnp
from jax.experimental import pallas as pl
from jax.experimental.pallas import tpu as pltpu


# -------------------------- Pallas kernel --------------------------

def qkv_kernel(x_ref, w_ref, b_ref, q_ref, k_ref, v_ref, *, compute_dtype):
    # x: (TM, C) f32 (cast in-kernel)   w: (C, 3C) compute_dtype   b: (1, 3C) f32
    # q/k/v: (TM, C) out_dtype  -- each a lane-dense slice of the fused result.
    x = x_ref[...].astype(compute_dtype)
    acc = jnp.dot(x, w_ref[...], preferred_element_type=jnp.float32)
    acc = acc + b_ref[...]                       # f32 epilogue (VPU-safe on v5e)
    C = q_ref.shape[-1]
    q_ref[...] = acc[:, 0 * C:1 * C].astype(q_ref.dtype)
    k_ref[...] = acc[:, 1 * C:2 * C].astype(k_ref.dtype)
    v_ref[...] = acc[:, 2 * C:3 * C].astype(v_ref.dtype)


# -------------------------- wrapper --------------------------

def attention_before(hidden_states, w_qkv, b_qkv, *, num_heads,
                     block_rows=512, compute_dtype=jnp.bfloat16,
                     out_dtype=jnp.float32):
    """Forward of Attention_Before.

    hidden_states: (B, N, C) f32
    w_qkv: (C, 3C) = [Wq | Wk | Wv] stored (in, out)  (== torch W.T), ideally pre-cast
           to `compute_dtype` once at weight-load time.
    b_qkv: (1, 3C) = [bq | bk | bv] f32
    returns (q, k, v), each (B, num_heads, N, C // num_heads) in `out_dtype`
    """
    B, N, C = hidden_states.shape
    C3 = w_qkv.shape[1]
    assert C3 == 3 * C
    hd = C // num_heads
    rows = B * N

    # Token-tile size: as large as block_rows allows, but keep >= 2 grid steps so both
    # v7x TensorCores are used; keep the sublane dim a multiple of 8.
    tm = min(block_rows, rows)
    if rows > 8 and pl.cdiv(rows, tm) < 2:
        tm = ((pl.cdiv(rows, 2) + 7) // 8) * 8
    grid_m = pl.cdiv(rows, tm)

    x2 = hidden_states.reshape(rows, C)              # free reshape, no cast/pad here
    if w_qkv.dtype != compute_dtype:                 # no-op when pre-cast outside jit
        w_qkv = w_qkv.astype(compute_dtype)
    b_qkv = b_qkv.astype(jnp.float32)

    wb = jnp.dtype(compute_dtype).itemsize
    ob = jnp.dtype(out_dtype).itemsize
    xb = jnp.dtype(hidden_states.dtype).itemsize

    # Explicit VMEM budget: single-buffered weight/bias, double-buffered token tiles.
    vmem_bytes = (C * C3 * wb                        # fused weight (Buffered(1))
                  + C3 * 4                           # bias
                  + 2 * tm * C * xb                  # x tiles (double-buffered)
                  + 2 * 3 * tm * C * ob)             # q/k/v tiles (double-buffered)
    vmem_bytes = min(128 << 20, max(16 << 20, int(1.5 * vmem_bytes) + (4 << 20)))

    cost = pl.CostEstimate(
        flops=2 * rows * C * C3,
        transcendentals=0,
        bytes_accessed=rows * C * xb + C * C3 * wb + C3 * 4 + 3 * rows * C * ob,
    )

    out_sds = jax.ShapeDtypeStruct((rows, C), out_dtype)
    q2, k2, v2 = pl.pallas_call(
        partial(qkv_kernel, compute_dtype=compute_dtype),
        out_shape=(out_sds, out_sds, out_sds),
        grid_spec=pltpu.PrefetchScalarGridSpec(
            num_scalar_prefetch=0,
            grid=(grid_m,),
            in_specs=[
                pl.BlockSpec((tm, C), lambda i: (i, 0)),            # token tile streams
                pl.BlockSpec((C, C3), lambda i: (0, 0),
                             pipeline_mode=pl.Buffered(1)),         # resident weight
                pl.BlockSpec((1, C3), lambda i: (0, 0),
                             pipeline_mode=pl.Buffered(1)),         # resident bias
            ],
            out_specs=[
                pl.BlockSpec((tm, C), lambda i: (i, 0)),
                pl.BlockSpec((tm, C), lambda i: (i, 0)),
                pl.BlockSpec((tm, C), lambda i: (i, 0)),
            ],
        ),
        compiler_params=pltpu.CompilerParams(
            dimension_semantics=("parallel",),
            vmem_limit_bytes=vmem_bytes,
        ),
        cost_estimate=cost,
    )(x2, w_qkv, b_qkv)

    # transpose_for_scores: required by the module's output contract (B, H, N, hd).
    # TODO(synk): a fused downstream attention kernel should consume the (rows, C)
    # slabs directly via its BlockSpec index_map and skip these layout passes.
    def t(y):
        return jnp.transpose(y.reshape(B, N, num_heads, hd), (0, 2, 1, 3))

    return t(q2), t(k2), t(v2)


# -------------------------- pure-JAX f32 reference --------------------------

def ref_attention_before(x, wq, bq, wk, bk, wv, bv, num_heads):
    B, N, C = x.shape
    hd = C // num_heads

    def t(y):  # transpose_for_scores
        return jnp.transpose(y.reshape(B, N, num_heads, hd), (0, 2, 1, 3))

    return t(x @ wq + bq), t(x @ wk + bk), t(x @ wv + bv)


# -------------------------- main --------------------------

if __name__ == "__main__":
    B = 2          # batch
    N = 256        # sequence length (tokens)  -> rows = 512, 2 parallel grid steps
    C = 128        # config.hidden_size  (lane-dense)
    H = 4          # config.transformer['num_heads']  -> head_dim = 32

    key = jax.random.PRNGKey(0)
    kx, kwq, kwk, kwv, kbq, kbk, kbv = jax.random.split(key, 7)

    x = jax.random.normal(kx, (B, N, C), jnp.float32)

    bound = 1.0 / math.sqrt(C)   # torch Linear default init range
    wq = jax.random.uniform(kwq, (C, C), jnp.float32, -bound, bound)
    wk = jax.random.uniform(kwk, (C, C), jnp.float32, -bound, bound)
    wv = jax.random.uniform(kwv, (C, C), jnp.float32, -bound, bound)
    bq = jax.random.uniform(kbq, (C,), jnp.float32, -bound, bound)
    bk = jax.random.uniform(kbk, (C,), jnp.float32, -bound, bound)
    bv = jax.random.uniform(kbv, (C,), jnp.float32, -bound, bound)

    # fuse the three projections into one weight / bias; pre-cast weight ONCE outside jit
    w_qkv = jnp.concatenate([wq, wk, wv], axis=1).astype(jnp.bfloat16)   # (C, 3C)
    b_qkv = jnp.concatenate([bq, bk, bv])[None, :]                       # (1, 3C) f32

    fwd = jax.jit(partial(attention_before, num_heads=H, block_rows=512,
                          compute_dtype=jnp.bfloat16, out_dtype=jnp.float32))
    q, k, v = fwd(x, w_qkv, b_qkv)
    jax.block_until_ready((q, k, v))

    rq, rk, rv = ref_attention_before(x, wq, bq, wk, bk, wv, bv, H)
    # NOTE: matmul runs in bf16 (f32 accumulation) for MXU throughput; tolerance below
    # reflects that intentional precision tradeoff vs the f32 torch module.
    for got, ref in ((q, rq), (k, rk), (v, rv)):
        assert got.shape == (B, H, N, C // H)
        np.testing.assert_allclose(np.asarray(got), np.asarray(ref),
                                   rtol=2e-2, atol=2e-2)

    print("KERNEL_OK")
</pallas_src>

<mosaic_0001>
module attributes {stable_mosaic.version = 11 : i64} {
  func.func @qkv_kernel(%arg0: i32, %arg1: memref<256x128xf32, #tpu.memory_space<vmem>>, %arg2: memref<128x384xbf16, #tpu.memory_space<vmem>>, %arg3: memref<1x384xf32, #tpu.memory_space<vmem>>, %arg4: memref<256x128xf32, #tpu.memory_space<vmem>>, %arg5: memref<256x128xf32, #tpu.memory_space<vmem>>, %arg6: memref<256x128xf32, #tpu.memory_space<vmem>>) attributes {dimension_semantics = [#tpu.dimension_semantics<parallel>], iteration_bounds = array<i64: 2>, scalar_prefetch = 0 : i64, scratch_operands = 0 : i64, tpu.core_type = #tpu.core_type<tc>, window_params = [{transform_indices = @transform_0, window_bounds = array<i64: 256, 128>}, {pipeline_mode = #tpu.pipeline_mode<synchronous>, transform_indices = @transform_1, window_bounds = array<i64: 128, 384>}, {pipeline_mode = #tpu.pipeline_mode<synchronous>, transform_indices = @transform_2, window_bounds = array<i64: 1, 384>}, {transform_indices = @transform_3, window_bounds = array<i64: 256, 128>}, {transform_indices = @transform_4, window_bounds = array<i64: 256, 128>}, {transform_indices = @transform_5, window_bounds = array<i64: 256, 128>}]} {
    %c0 = arith.constant 0 : index
    %c0_0 = arith.constant 0 : index
    %0 = vector.load %arg1[%c0, %c0_0] : memref<256x128xf32, #tpu.memory_space<vmem>>, vector<256x128xf32>
    %1 = arith.truncf %0 : vector<256x128xf32> to vector<256x128xbf16>
    %c0_1 = arith.constant 0 : index
    %c0_2 = arith.constant 0 : index
    %2 = vector.load %arg2[%c0_1, %c0_2] : memref<128x384xbf16, #tpu.memory_space<vmem>>, vector<128x384xbf16>
    %cst = arith.constant dense<0.000000e+00> : vector<256x384xf32>
    %3 = tpu.matmul %1, %2, %cst {dimension_numbers = #tpu.dot_dimension_numbers<[1], [0], [0], [1], [0, 0, 1, 1], [], []>} : vector<256x128xbf16>, vector<128x384xbf16>, vector<256x384xf32> -> vector<256x384xf32>
    %c0_3 = arith.constant 0 : index
    %c0_4 = arith.constant 0 : index
    %4 = vector.load %arg3[%c0_3, %c0_4] : memref<1x384xf32, #tpu.memory_space<vmem>>, vector<1x384xf32>
    %5 = vector.broadcast %4 : vector<1x384xf32> to vector<256x384xf32>
    %6 = arith.addf %3, %5 : vector<256x384xf32>
    %7 = vector.extract_strided_slice %6 {offsets = [0, 0], sizes = [256, 128], strides = [1, 1]} : vector<256x384xf32> to vector<256x128xf32>
    %c0_5 = arith.constant 0 : index
    %c0_6 = arith.constant 0 : index
    %8 = vector.load %arg4[%c0_5, %c0_6] : memref<256x128xf32, #tpu.memory_space<vmem>>, vector<256x128xf32>
    tpu.vector_store %arg4[%c0_5, %c0_6], %7 {strides = array<i32>} : memref<256x128xf32, #tpu.memory_space<vmem>>, vector<256x128xf32>,
    %9 = vector.extract_strided_slice %6 {offsets = [0, 128], sizes = [256, 128], strides = [1, 1]} : vector<256x384xf32> to vector<256x128xf32>
    %c0_7 = arith.constant 0 : index
    %c0_8 = arith.constant 0 : index
    %10 = vector.load %arg5[%c0_7, %c0_8] : memref<256x128xf32, #tpu.memory_space<vmem>>, vector<256x128xf32>
    tpu.vector_store %arg5[%c0_7, %c0_8], %9 {strides = array<i32>} : memref<256x128xf32, #tpu.memory_space<vmem>>, vector<256x128xf32>,
    %11 = vector.extract_strided_slice %6 {offsets = [0, 256], sizes = [256, 128], strides = [1, 1]} : vector<256x384xf32> to vector<256x128xf32>
    %c0_9 = arith.constant 0 : index
    %c0_10 = arith.constant 0 : index
    %12 = vector.load %arg6[%c0_9, %c0_10] : memref<256x128xf32, #tpu.memory_space<vmem>>, vector<256x128xf32>
    tpu.vector_store %arg6[%c0_9, %c0_10], %11 {strides = array<i32>} : memref<256x128xf32, #tpu.memory_space<vmem>>, vector<256x128xf32>,
    return
  }
  func.func @transform_0(%arg0: i32) -> (i32, i32) {
    %c0_i32 = arith.constant 0 : i32
    %c0_i32_0 = arith.constant 0 : i32
    return %arg0, %c0_i32 : i32, i32
  }
  func.func @transform_1(%arg0: i32) -> (i32, i32) {
    %c0_i32 = arith.constant 0 : i32
    %c0_i32_0 = arith.constant 0 : i32
    %c0_i32_1 = arith.constant 0 : i32
    return %c0_i32, %c0_i32_0 : i32, i32
  }
  func.func @transform_2(%arg0: i32) -> (i32, i32) {
    %c0_i32 = arith.constant 0 : i32
    %c0_i32_0 = arith.constant 0 : i32
    %c0_i32_1 = arith.constant 0 : i32
    return %c0_i32, %c0_i32_0 : i32, i32
  }
  func.func @transform_3(%arg0: i32) -> (i32, i32) {
    %c0_i32 = arith.constant 0 : i32
    %c0_i32_0 = arith.constant 0 : i32
    return %arg0, %c0_i32 : i32, i32
  }
  func.func @transform_4(%arg0: i32) -> (i32, i32) {
    %c0_i32 = arith.constant 0 : i32
    %c0_i32_0 = arith.constant 0 : i32
    return %arg0, %c0_i32 : i32, i32
  }
  func.func @transform_5(%arg0: i32) -> (i32, i32) {
    %c0_i32 = arith.constant 0 : i32
    %c0_i32_0 = arith.constant 0 : i32
    return %arg0, %c0_i32 : i32, i32
  }
}

</mosaic_0001>

<bundles_post_ra>
// kernel: attention_before.1
= control target key start
LH: loop header
LB: loop body
LE: loop exit
PB: predicated region body
PF: predicated region fallthrough
CT: control target
= control target key end

     0   :  { %11 = vsyncpa [#allocation3], 0  ;;  %s1903_s0 = inlined_call_operand.hbm [shape: f32[512,128], index: 0, kind: input, shape index: {}]   ;;  %s1904_s1 = inlined_call_operand.hbm [shape: bf16[128,384], index: 1, kind: input, shape index: {}]   ;;  %s1905_s2 = inlined_call_operand.vmem [shape: f32[1,384], index: 2, kind: input, shape index: {}]   ;;  %s1906_s3 = inlined_call_operand.vmem [shape: f32[512,128], index: 3, kind: output, shape index: {0}]   ;;  %s1907_s4 = inlined_call_operand.vmem [shape: f32[512,128], index: 4, kind: output, shape index: {1}]   ;;  %s1908_s5 = inlined_call_operand.vmem [shape: f32[512,128], index: 5, kind: output, shape index: {2}]  }
   0x1   :  { %13 = vsyncpa [#allocation3 + $0x1], 0 }
   0x2   :  { %14 = vsyncpa [#allocation5], 0  ;;  %s1464_s18 = smov 0   ;;  %s1466_s19 = smov 0  }
   0x3   :  { %s1468_s20 = smov 0   ;;  %s1470_s21 = smov 0  }
   0x4 LB: > { %s1110_s22 = sadd.s32 4294967295, %s1425_s21   ;;  %p40_p0 = scmp.ne.s32.totalorder %s1417_s19, %s1413_s18  ;;  %s1425_s21 = sphi %s1470_s21, %s1924_s21   ;;  %s1421_s20 = sphi %s1468_s20, %s1923_s20   ;;  %s1417_s19 = sphi %s1466_s19, %s1922_s19   ;;  %s1413_s18 = sphi %s1464_s18, %s1921_s18  }
   0x5   : > { %p1486_p1 = scmp.eq.s32.totalorder %s1110_s22, 0  ;;  %p1112_p2 = scmp.ge.s32.totalorder %s1425_s21, 1 }
   0x6   : > { %p171_p3 = scmp.lt.s32.totalorder %s1425_s21, 3  ;;  %s1427_s26 = smov [#allocation4]  }
   0x7   : > { %s1913_s23 = scalar_select %p1486_p1, 1, 0 }
   0x8   : > { %p1494_p4 = por %p1486_p1, %p40_p0  ;;  %p1498_p5 = pnand %p1112_p2, %p171_p3 }
   0x9   : > { %s183_s27 = sshll.u32 %s1427_s26, 4  ;;  %s1511_s29 = sadd.s32 1, %s1425_s21   ;;  %s184_s27 = int_to_ptr.vmem [resolvable:$true] %s183_s27 }
   0xa   : > { %s1914_s24 = scalar_select %p1494_p4, 1, 0 }
   0xb   : > { %s1915_s25 = scalar_select %p1498_p5, 1, 0 }
   0xc   : > { %p1248_p6 = pneg %p1498_p5  ;;  %s27_s30 = sadd.s32 1, %s1421_s20 }
   0xd   : > { %s24_s6 = ssub.s32 %s1425_s21, %s1511_s29  ;;  %s1329_s9 = scalar_lea.hbm %s1904_s1, 3072 }
   0xe   : > { %p1506_p7 = pnand %p1248_p6, %p1486_p1  ;;  %p1330_p8 = scmp.ne.s32.totalorder %s1904_s1, %s1329_s9 }
   0xf   : > { %p1336_p12 = scmp.lt.u32.totalorder %s1329_s9, %s1904_s1 }
  0x10   : > { %p1331_p9 = pneg %p1506_p7 }
  0x12   : > { %p1332_p10 = pnand %p1331_p9, %p1330_p8 }
  0x14   : > { %p1333_p11 = pneg %p1332_p10 }
  0x16   : > { %p1338_p13 = pnand %p1336_p12, %p1333_p11 }
  0x18   : > { %1341 = shalt.err (!%p1338_p13)
}
  0x19   : > { %s1342_s14 = scalar_lea.vmem %s184_s27, 3072  ;;  %p1350_p6 = scmp.lt.s32.totalorder %s184_s27, %s184_s27 }
  0x1a   : > { %p1343_p0 = scmp.ne.s32.totalorder %s184_s27, %s1342_s14  ;;  %p1351_p1 = scmp.lt.s32.totalorder %s1342_s14, %s1342_s14 }
  0x1c   : > { %p1345_p2 = pnand %p1343_p0, %p1331_p9  ;;  %p1352_p4 = por %p1351_p1, %p1350_p6 }
  0x1e   : > { %p1346_p3 = pneg %p1345_p2 }
  0x20   : > { %p1353_p5 = pnand %p1352_p4, %p1346_p3 }
  0x22   : > { %1356 = shalt.err (!%p1353_p5)
}
  0x23   : > { %s1428_s15 = smov 192   ;;  %s1429_s16 = smov 12  }
  0x24   : > { %1251 = dma.hbm_to_vmem [thread:$0]  (!%p1506_p7), %s1904_s1, 3072, %s184_s27, [#allocation5], %s1428_s15, %s1428_s15, %s1429_s16  }
  0x25   : > { %p25_p8 = scmp.eq.s32.totalorder %s24_s6, 0  ;;  %p34_p9 = scmp.ne.s32.totalorder %s1421_s20, %s1417_s19 }
  0x26   : > { %p35_p1 = scmp.eq.s32.totalorder %s1425_s21, 0  ;;  %p1257_p4 = scmp.lt.s32.totalorder %s1425_s21, 2 }
  0x27   : > { %s1537_s26 = scalar_select %p25_p8, %s1421_s20, %s27_s30  }
  0x28   : > { %p36_p5 = por %p35_p1, %p34_p9  ;;  %s200_s7 = sand.u32 1, %s1421_s20  }
  0x29   : > { %s1115_s8 = sshll.u32 %s200_s7, 8  ;;  %s1153_s9 = sshll.u32 %s1425_s21, 12 }
  0x2a   : > { %s1544_s12 = scalar_lea.hbm %s1903_s0, %s1153_s9  ;;  %s204_s27 = scalar_lea.vmem [#allocation2], %s1115_s8 }
  0x2b   : > { %s211_s28 = sshll.u32 %s204_s27, 4  ;;  %p1548_p7 = pnand %p1257_p4, %p36_p5  ;;  %s1546_s28 = int_to_ptr.vmem [resolvable:$true] %s211_s28 }
  0x2c   : > { %s1552_s6 = scalar_lea.sflag [#allocation3], %s200_s7  ;;  %s1357_s13 = scalar_lea.hbm %s1544_s12, 4096 }
  0x2d   : > { %p1358_p10 = scmp.ne.s32.totalorder %s1544_s12, %s1357_s13  ;;  %p1359_p11 = pneg %p1548_p7 }
  0x2e   : > { %s1362_s16 = scalar_lea.hbm %s1903_s0, 8192  ;;  %p1363_p0 = scmp.lt.u32.totalorder %s1544_s12, %s1903_s0 }
  0x2f   : > { %p1360_p12 = pnand %p1359_p11, %p1358_p10  ;;  %p1364_p2 = scmp.lt.u32.totalorder %s1362_s16, %s1357_s13 }
  0x30   : > { %p1366_p6 = scmp.lt.u32.totalorder %s1357_s13, %s1544_s12 }
  0x31   : > { %p1361_p13 = pneg %p1360_p12  ;;  %p1365_p3 = por %p1364_p2, %p1363_p0 }
  0x33   : > { %p1367_p8 = por %p1366_p6, %p1365_p3 }
  0x35   : > { %p1368_p9 = pnand %p1367_p8, %p1361_p13 }
  0x37   : > { %1371 = shalt.err (!%p1368_p9)
}
  0x38   : > { %s1372_s7 = scalar_lea.vmem %s1546_s28, 4096  ;;  %s1430_s8 = smov [#allocation2]  }
  0x39   : > { %p1373_p1 = scmp.ne.s32.totalorder %s1546_s28, %s1372_s7  ;;  %s1377_s9 = sshll.u32 %s1430_s8, 4  ;;  %s1378_s9 = int_to_ptr.vmem [resolvable:$false] %s1377_s9 }
  0x3a   : > { %s1379_s10 = scalar_lea.vmem %s1378_s9, 8192  ;;  %p1380_p10 = scmp.lt.s32.totalorder %s1546_s28, %s1378_s9 }
  0x3b   : > { %p1375_p4 = pnand %p1373_p1, %p1359_p11  ;;  %p1381_p12 = scmp.lt.s32.totalorder %s1379_s10, %s1372_s7 }
  0x3d   : > { %p1376_p5 = pneg %p1375_p4  ;;  %p1382_p0 = por %p1381_p12, %p1380_p10 }
  0x3f   : > { %p1383_p2 = pnand %p1382_p0, %p1376_p5 }
  0x41   : > { %1386 = shalt.err (!%p1383_p2)
}
  0x42   : > { %s1431_s11 = smov 128   ;;  %s1432_s27 = smov 8  }
  0x43   : > { %1255 = dma.hbm_to_vmem [thread:$0]  (!%p1548_p7), %s1544_s12, 4096, %s1546_s28, %s1552_s6, %s1431_s11, %s1431_s11, %s1432_s27  }
  0x44   : > { %p1918_p11 = scmp.ne.s32.totalorder %s1915_s25, 0 }
  0x45   : > { %s225_s13 = sand.u32 (!%p1918_p11), 1, %s1417_s19   ;;  %p1919_p13 = scmp.ne.s32.totalorder (!%p1918_p11), %s1914_s24, 0 }
  0x46   : > { %223 = sbr.rel (%p1918_p11) target bundleno = 421 (0x1a5), region = 32  ;;  %s1119_s14 = sshll.u32 (!%p1918_p11), %s225_s13, 8 }
  0x47   : > { %s226_s15 = scalar_lea.sflag (!%p1918_p11), [#allocation3], %s225_s13  ;;  %s1583_s16 = scalar_lea.vmem (!%p1918_p11), [#allocation2], %s1119_s14 }
  0x4d   : > { %1404 = dma.done.wait (%p1919_p13), %s226_s15, 4096  }
  0x4e   : > { %1406 = vsyncadd (%p1919_p13), %s226_s15, 4294963200  ;;  %p1920_p3 = scmp.ne.s32.totalorder %s1913_s23, 0 }
  0x50   : > { %1408 = dma.done.wait (%p1920_p3), [#allocation5], 3072  }
  0x51   : > { %1410 = vsyncadd (%p1920_p3), [#allocation5], 4294964224  ;;  %v1433_v0 = vmov 0   ;;  %v1297_v1 = vld [vmem:[#allocation4 + $0x4] ss:$12 sps:$4 sm:$0xff]   ;;  %v291_v18 = vld [vmem:[%s1583_s16 + $0x8] sm:$0xff] }
  0x52   : > { %547 = vmatprep.mubr.bf16.mxu0 %v1433_v0  ;;  %667 = vmatprep.mubr.bf16.mxu1 %v1433_v0  ;;  %v1299_v2 = vld [vmem:[#allocation4] ss:$12 sps:$4 sm:$0xff]   ;;  %v1300_v3 = vld [vmem:[#allocation4 + $0x1c] ss:$12 sps:$4 sm:$0xff]   ;;  %v1302_v4 = vld [vmem:[#allocation4 + $0x18] ss:$12 sps:$4 sm:$0xff]  }
  0x53   : > { %515 = vmatprep.subr.bf16.mxu0 %v1297_v1  ;;  %1226 = vmatprep.subr.bf16.mxu1 %v1297_v1  ;;  %v1303_v5 = vld [vmem:[#allocation4 + $0x34] ss:$12 sps:$4 sm:$0xff]   ;;  %v1305_v6 = vld [vmem:[#allocation4 + $0x30] ss:$12 sps:$4 sm:$0xff]   ;;  %v1306_v7 = vld [vmem:[#allocation4 + $0x4c] ss:$12 sps:$4 sm:$0xff]  }
  0x54   : > { %516 = vmatpush1.bf16.msra.mxu0 %v1299_v2  ;;  %1234 = vmatpush1.bf16.msra.mxu1 %v1299_v2  ;;  %v1308_v8 = vld [vmem:[#allocation4 + $0x48] ss:$12 sps:$4 sm:$0xff]   ;;  %v1309_v9 = vld [vmem:[#allocation4 + $0x64] ss:$12 sps:$4 sm:$0xff]   ;;  %v1311_v10 = vld [vmem:[#allocation4 + $0x60] ss:$12 sps:$4 sm:$0xff]  }
  0x55   : > { %517 = vmatprep.subr.bf16.mxu0 %v1300_v3  ;;  %1227 = vmatprep.subr.bf16.mxu1 %v1300_v3  ;;  %v1312_v11 = vld [vmem:[#allocation4 + $0x7c] ss:$12 sps:$4 sm:$0xff]   ;;  %v1314_v12 = vld [vmem:[#allocation4 + $0x78] ss:$12 sps:$4 sm:$0xff]   ;;  %v1315_v13 = vld [vmem:[#allocation4 + $0x94] ss:$12 sps:$4 sm:$0xff]  }
  0x56   : > { %v1317_v14 = vld [vmem:[#allocation4 + $0x90] ss:$12 sps:$4 sm:$0xff]   ;;  %v1318_v15 = vld [vmem:[#allocation4 + $0xac] ss:$12 sps:$4 sm:$0xff]   ;;  %v1320_v16 = vld [vmem:[#allocation4 + $0xa8] ss:$12 sps:$4 sm:$0xff]  }
  0x57   : > { %v290_v17 = vld [vmem:[%s1583_s16] sm:$0xff]  ;;  %v315_v20 = vld [vmem:[%s1583_s16 + $0xc8] sm:$0xff]  ;;  %v292_v25 = vld [vmem:[%s1583_s16 + $0x10] sm:$0xff]  ;;  %s1121_s23 = sshll.u32 %s1110_s22, 5 }
  0x58   : > { %518 = vmatpush1.bf16.msra.mxu0 %v1302_v4  ;;  %1235 = vmatpush1.bf16.msra.mxu1 %v1302_v4  ;;  %v314_v19 = vld [vmem:[%s1583_s16 + $0xc0] sm:$0xff]  ;;  %v1321_v21 = vld [vmem:[#allocation4 + $0x8] ss:$12 sps:$4 sm:$0xff]   ;;  %v322_v22 = vpack.c.bf16 %v291_v18, %v290_v17  ;;  %v293_v26 = vld [vmem:[%s1583_s16 + $0x18] sm:$0xff]  ;;  %p272_p7 = scmp.lt.s32.totalorder %s1121_s23, 63 }
  0x59   : > { %519 = vmatprep.subr.bf16.mxu0 %v1303_v5  ;;  %1228 = vmatprep.subr.bf16.mxu1 %v1303_v5  ;;  %v1599_v23 = vpack.c.bf16 %v315_v20, %v314_v19  ;;  %v1322_v24 = vld [vmem:[#allocation4 + $0x20] ss:$12 sps:$4 sm:$0xff]   ;;  %v316_v27 = vld [vmem:[%s1583_s16 + $0xd0] sm:$0xff]  ;;  %v317_v28 = vld [vmem:[%s1583_s16 + $0xd8] sm:$0xff]  ;;  %v323_v30 = vpack.c.bf16 %v293_v26, %v292_v25 }
  0x5a   : > { %v1323_v29 = vld [vmem:[#allocation4 + $0x38] ss:$12 sps:$4 sm:$0xff]   ;;  %v1608_v31 = vpack.c.bf16 %v317_v28, %v316_v27  ;;  %v1324_v32 = vld [vmem:[#allocation4 + $0x50] ss:$12 sps:$4 sm:$0xff]   ;;  %v295_v34 = vld [vmem:[%s1583_s16 + $0x28] sm:$0xff]  ;;  %s1926_s23 = smov (!%p272_p7, %s1121_s23), 63 }
  0x5b   : > { %v294_v33 = vld [vmem:[%s1583_s16 + $0x20] sm:$0xff]  ;;  %v319_v36 = vld [vmem:[%s1583_s16 + $0xe8] sm:$0xff]  ;;  %v296_v41 = vld [vmem:[%s1583_s16 + $0x30] sm:$0xff]  ;;  %s1668_s12 = sshll.u32 %s1926_s23, 3 }
  0x5c   : > { %520 = vmatpush1.bf16.msra.mxu0 %v1305_v6  ;;  %1236 = vmatpush1.bf16.msra.mxu1 %v1305_v6  ;;  %v318_v35 = vld [vmem:[%s1583_s16 + $0xe0] sm:$0xff]  ;;  %v1325_v37 = vld [vmem:[#allocation4 + $0x68] ss:$12 sps:$4 sm:$0xff]   ;;  %v324_v38 = vpack.c.bf16 %v295_v34, %v294_v33  ;;  %v297_v42 = vld [vmem:[%s1583_s16 + $0x38] sm:$0xff]  ;;  %s1680_s28 = scalar_lea.vmem %s1906_s3, %s1668_s12  ;;  %s1688_s17 = scalar_lea.vmem %s1907_s4, %s1668_s12 }
  0x5d   : > { %521 = vmatprep.subr.bf16.mxu0 %v1306_v7  ;;  %1229 = vmatprep.subr.bf16.mxu1 %v1306_v7  ;;  %v1617_v39 = vpack.c.bf16 %v319_v36, %v318_v35  ;;  %v1326_v40 = vld [vmem:[#allocation4 + $0x80] ss:$12 sps:$4 sm:$0xff]   ;;  %v320_v43 = vld [vmem:[%s1583_s16 + $0xf0] sm:$0xff]  ;;  %v321_v44 = vld [vmem:[%s1583_s16 + $0xf8] sm:$0xff]  ;;  %v325_v46 = vpack.c.bf16 %v297_v42, %v296_v41  ;;  %s1760_s8 = scalar_lea.vmem %s1908_s5, %s1668_s12 }
  0x5e   : > { %v1327_v45 = vld [vmem:[#allocation4 + $0x98] ss:$12 sps:$4 sm:$0xff]   ;;  %v1626_v47 = vpack.c.bf16 %v321_v44, %v320_v43  ;;  %v1328_v48 = vld [vmem:[#allocation4 + $0xb0] ss:$12 sps:$4 sm:$0xff]   ;;  %v299_v50 = vld [vmem:[%s1583_s16 + $0x48] sm:$0xff] }
  0x5f   : > { %v298_v49 = vld [vmem:[%s1583_s16 + $0x40] sm:$0xff]  ;;  %v300_v52 = vld [vmem:[%s1583_s16 + $0x50] sm:$0xff]  ;;  %v301_v53 = vld [vmem:[%s1583_s16 + $0x58] sm:$0xff] }
  0x60   : > { %522 = vmatpush1.bf16.msra.mxu0 %v1308_v8  ;;  %1237 = vmatpush1.bf16.msra.mxu1 %v1308_v8  ;;  %v326_v51 = vpack.c.bf16 %v299_v50, %v298_v49  ;;  %v327_v54 = vpack.c.bf16 %v301_v53, %v300_v52  ;;  %v302_v55 = vld [vmem:[%s1583_s16 + $0x60] sm:$0xff]  ;;  %v303_v56 = vld [vmem:[%s1583_s16 + $0x68] sm:$0xff]  ;;  %v304_v58 = vld [vmem:[%s1583_s16 + $0x70] sm:$0xff] }
  0x61   : > { %523 = vmatprep.subr.bf16.mxu0 %v1309_v9  ;;  %1230 = vmatprep.subr.bf16.mxu1 %v1309_v9  ;;  %v328_v57 = vpack.c.bf16 %v303_v56, %v302_v55  ;;  %v305_v59 = vld [vmem:[%s1583_s16 + $0x78] sm:$0xff]  ;;  %v306_v60 = vld [vmem:[%s1583_s16 + $0x80] sm:$0xff]  ;;  %v307_v61 = vld [vmem:[%s1583_s16 + $0x88] sm:$0xff] }
  0x62   : > { %v329_v62 = vpack.c.bf16 %v305_v59, %v304_v58  ;;  %v330_v63 = vpack.c.bf16 %v307_v61, %v306_v60  ;;  %v308_v1 = vld [vmem:[%s1583_s16 + $0x90] sm:$0xff]  ;;  %v309_v2 = vld [vmem:[%s1583_s16 + $0x98] sm:$0xff]  ;;  %v310_v3 = vld [vmem:[%s1583_s16 + $0xa0] sm:$0xff] }
  0x63   : > { %v311_v4 = vld [vmem:[%s1583_s16 + $0xa8] sm:$0xff]  ;;  %v331_v5 = vpack.c.bf16 %v309_v2, %v308_v1  ;;  %v312_v7 = vld [vmem:[%s1583_s16 + $0xb0] sm:$0xff]  ;;  %v313_v8 = vld [vmem:[%s1583_s16 + $0xb8] sm:$0xff] }
  0x64   : > { %524 = vmatpush1.bf16.msra.mxu0 %v1311_v10  ;;  %1238 = vmatpush1.bf16.msra.mxu1 %v1311_v10  ;;  %v332_v6 = vpack.c.bf16 %v311_v4, %v310_v3  ;;  %v333_v9 = vpack.c.bf16 %v313_v8, %v312_v7  ;;  %v372_v10 = vlaneseq }
  0x65   : > { %525 = vmatprep.subr.bf16.mxu0 %v1312_v11  ;;  %1231 = vmatprep.subr.bf16.mxu1 %v1312_v11 }
  0x66   : > { %v1659_v11 = vshrl.u32 %v372_v10, 7 }
  0x68   : > { %526 = vmatpush1.bf16.msra.mxu0 %v1314_v12  ;;  %1239 = vmatpush1.bf16.msra.mxu1 %v1314_v12  ;;  %v374_v12 = vsub.s32 0, %v1659_v11  ;;  %v382_v7 = vsub.s32 2, %v1659_v11 }
  0x69   : > { %527 = vmatprep.subr.bf16.mxu0 %v1315_v13  ;;  %1232 = vmatprep.subr.bf16.mxu1 %v1315_v13  ;;  %v1665_v13 = vld [vmem:[%s1905_s2] sm:$0x7] }
  0x6c   : > { %528 = vmatpush1.bf16.msra.mxu0 %v1317_v14  ;;  %1240 = vmatpush1.bf16.msra.mxu1 %v1317_v14  ;;  %v1671_v14 = vrot.slane %v1665_v13, %v374_v12 }
  0x6d   : > { %529 = vmatprep.subr.bf16.mxu0 %v1318_v15  ;;  %1233 = vmatprep.subr.bf16.mxu1 %v1318_v15 }
  0x70   : > { %530 = vmatpush1.bf16.msra.mxu0 %v1320_v16  ;;  %1241 = vmatpush1.bf16.msra.mxu1 %v1320_v16 }
  0x71   : > { %1178 = vmatprep.subr.bf16.mxu1 %v1321_v21 }
  0x73   : > { %548 = vmatmul.mubr.bf16.vlgmr.msra.gmra.mrb[0].mxu0 %v322_v22  ;;  %668 = vmatmul.mubr.bf16.vlgmr.msra.gmra.mrb[0].mxu1 %v1599_v23 }
  0x74   : > { %1179 = vmatpush3.bf16.msra.mxu1 %v1321_v21  ;;  %557 = vmatprep.mubr.bf16.mxu0 %v1433_v0 }
  0x75   : > { %1180 = vmatprep.subr.bf16.mxu1 %v1322_v24  ;;  %677 = vmatprep.mubr.bf16.mxu1 %v1433_v0 }
  0x78   : > { %1181 = vmatpush3.bf16.msra.mxu1 %v1322_v24 }
  0x79   : > { %1182 = vmatprep.subr.bf16.mxu1 %v1323_v29 }
  0x7b   : > { %558 = vmatmul.mubr.bf16.gmra.mrb[4].mxu0 %v323_v30  ;;  %678 = vmatmul.mubr.bf16.gmra.mrb[4].mxu1 %v1608_v31 }
  0x7c   : > { %1183 = vmatpush3.bf16.msra.mxu1 %v1323_v29  ;;  %567 = vmatprep.mubr.bf16.mxu0 %v1433_v0 }
  0x7d   : > { %1184 = vmatprep.subr.bf16.mxu1 %v1324_v32  ;;  %687 = vmatprep.mubr.bf16.mxu1 %v1433_v0 }
  0x80   : > { %1185 = vmatpush3.bf16.msra.mxu1 %v1324_v32 }
  0x81   : > { %1186 = vmatprep.subr.bf16.mxu1 %v1325_v37 }
  0x83   : > { %568 = vmatmul.mubr.bf16.gmra.mrb[8].mxu0 %v324_v38  ;;  %688 = vmatmul.mubr.bf16.gmra.mrb[8].mxu1 %v1617_v39 }
  0x84   : > { %1187 = vmatpush3.bf16.msra.mxu1 %v1325_v37  ;;  %577 = vmatprep.mubr.bf16.mxu0 %v1433_v0 }
  0x85   : > { %1188 = vmatprep.subr.bf16.mxu1 %v1326_v40  ;;  %697 = vmatprep.mubr.bf16.mxu1 %v1433_v0 }
  0x88   : > { %1189 = vmatpush3.bf16.msra.mxu1 %v1326_v40 }
  0x89   : > { %1190 = vmatprep.subr.bf16.mxu1 %v1327_v45 }
  0x8b   : > { %578 = vmatmul.mubr.bf16.gmra.mrb[12].mxu0 %v325_v46  ;;  %698 = vmatmul.mubr.bf16.gmra.mrb[12].mxu1 %v1626_v47 }
  0x8c   : > { %1191 = vmatpush3.bf16.msra.mxu1 %v1327_v45  ;;  %587 = vmatprep.mubr.bf16.mxu0 %v1433_v0 }
  0x8d   : > { %1192 = vmatprep.subr.bf16.mxu1 %v1328_v48  ;;  %1194 = vmatprep.mubr.bf16.mxu1 %v322_v22 }
  0x90   : > { %1193 = vmatpush3.bf16.msra.mxu1 %v1328_v48 }
  0x93   : > { %588 = vmatmul.mubr.bf16.gmra.mrb[16].mxu0 %v326_v51  ;;  %1195 = vmatmul.mubr.bf16.vlgmr.msra.gmra.mrb[16].mxu1 %v323_v30 }
  0x94   : > { %597 = vmatprep.mubr.bf16.mxu0 %v1433_v0  ;;  %1198 = vmatprep.mubr.bf16.mxu1 %v324_v38 }
  0x9b   : > { %598 = vmatmul.mubr.bf16.gmra.mrb[20].mxu0 %v327_v54  ;;  %1199 = vmatmul.mubr.bf16.gmra.mrb[20].mxu1 %v325_v46 }
  0x9c   : > { %607 = vmatprep.mubr.bf16.mxu0 %v1433_v0  ;;  %1202 = vmatprep.mubr.bf16.mxu1 %v326_v51 }
  0xa3   : > { %608 = vmatmul.mubr.bf16.gmra.mrb[24].mxu0 %v328_v57  ;;  %1203 = vmatmul.mubr.bf16.gmra.mrb[24].mxu1 %v327_v54 }
  0xa4   : > { %617 = vmatprep.mubr.bf16.mxu0 %v1433_v0  ;;  %1206 = vmatprep.mubr.bf16.mxu1 %v328_v57 }
  0xab   : > { %618 = vmatmul.mubr.bf16.gmra.mrb[28].mxu0 %v329_v62  ;;  %1207 = vmatmul.mubr.bf16.gmra.mrb[28].mxu1 %v329_v62 }
  0xac   : > { %627 = vmatprep.mubr.bf16.mxu0 %v1433_v0  ;;  %1210 = vmatprep.mubr.bf16.mxu1 %v330_v63 }
  0xb3   : > { %628 = vmatmul.mubr.bf16.gmra.mrb[32].mxu0 %v330_v63  ;;  %1211 = vmatmul.mubr.bf16.gmra.mrb[32].mxu1 %v331_v5 }
  0xb4   : > { %637 = vmatprep.mubr.bf16.mxu0 %v1433_v0  ;;  %1214 = vmatprep.mubr.bf16.mxu1 %v332_v6 }
  0xbb   : > { %638 = vmatmul.mubr.bf16.gmra.mrb[36].mxu0 %v331_v5  ;;  %1215 = vmatmul.mubr.bf16.gmra.mrb[36].mxu1 %v333_v9 }
  0xbc   : > { %647 = vmatprep.mubr.bf16.mxu0 %v1433_v0  ;;  %1218 = vmatprep.mubr.bf16.mxu1 %v1599_v23 }
  0xc3   : > { %648 = vmatmul.mubr.bf16.gmra.mrb[40].mxu0 %v332_v6  ;;  %1219 = vmatmul.mubr.bf16.gmra.mrb[40].mxu1 %v1608_v31 }
  0xc4   : > { %657 = vmatprep.mubr.bf16.mxu0 %v1433_v0  ;;  %1222 = vmatprep.mubr.bf16.mxu1 %v1617_v39  ;;  %v378_v0 = vsub.s32 1, %v1659_v11 }
  0xc6   : > { %v1674_v15 = vrot.slane %v1665_v13, %v378_v0 }
  0xcb   : > { %658 = vmatmul.mubr.bf16.gmra.mrb[44].mxu0 %v333_v9  ;;  %1223 = vmatmul.mubr.bf16.gmra.mrb[44].mxu1 %v1626_v47 }
 0x146   : > { %v549_v16 = vpop.f32.mrb[0].mxu0  ;;  %v669_v17 = vpop.f32.mrb[0].mxu1 }
 0x147   : > { %v550_v18 = vadd.f32 %v549_v16, %v1671_v14  ;;  %v670_v19 = vadd.f32 %v669_v17, %v1671_v14  ;;  %v551_v20 = vpop.f32.mrb[1].mxu0  ;;  %v671_v21 = vpop.f32.mrb[1].mxu1 }
 0x148   : > { %v552_v22 = vadd.f32 %v551_v20, %v1674_v15  ;;  %v672_v23 = vadd.f32 %v671_v21, %v1674_v15  ;;  %v553_v24 = vpop.f32.mrb[2].mxu0  ;;  %v673_v25 = vpop.f32.mrb[2].mxu1  ;;  %v1752_v20 = vrot.slane %v1665_v13, %v382_v7 }
 0x149   : > { %869 = vst [vmem:[%s1680_s28] sm:$0xff] %v550_v18  ;;  %893 = vst [vmem:[%s1680_s28 + $0xc0] sm:$0xff] %v670_v19  ;;  %v554_v26 = vadd.f32 %v553_v24, %v1671_v14  ;;  %v674_v27 = vadd.f32 %v673_v25, %v1671_v14  ;;  %v555_v28 = vpop.f32.mrb[3].mxu0  ;;  %v675_v29 = vpop.f32.mrb[3].mxu1 }
 0x14a   : > { %901 = vst [vmem:[%s1688_s17] sm:$0xff] %v552_v22  ;;  %925 = vst [vmem:[%s1688_s17 + $0xc0] sm:$0xff] %v672_v23  ;;  %v556_v30 = vadd.f32 %v555_v28, %v1674_v15  ;;  %v676_v31 = vadd.f32 %v675_v29, %v1674_v15 }
 0x14b   : > { %870 = vst [vmem:[%s1680_s28 + $0x8] sm:$0xff] %v554_v26  ;;  %894 = vst [vmem:[%s1680_s28 + $0xc8] sm:$0xff] %v674_v27 }
 0x14c   : > { %902 = vst [vmem:[%s1688_s17 + $0x8] sm:$0xff] %v556_v30  ;;  %926 = vst [vmem:[%s1688_s17 + $0xc8] sm:$0xff] %v676_v31 }
 0x14e   : > { %v559_v32 = vpop.f32.mrb[4].mxu0  ;;  %v679_v33 = vpop.f32.mrb[4].mxu1 }
 0x14f   : > { %v560_v34 = vadd.f32 %v559_v32, %v1671_v14  ;;  %v680_v35 = vadd.f32 %v679_v33, %v1671_v14  ;;  %v561_v36 = vpop.f32.mrb[5].mxu0  ;;  %v681_v37 = vpop.f32.mrb[5].mxu1 }
 0x150   : > { %v562_v38 = vadd.f32 %v561_v36, %v1674_v15  ;;  %v682_v39 = vadd.f32 %v681_v37, %v1674_v15  ;;  %v563_v40 = vpop.f32.mrb[6].mxu0  ;;  %v683_v41 = vpop.f32.mrb[6].mxu1 }
 0x151   : > { %871 = vst [vmem:[%s1680_s28 + $0x10] sm:$0xff] %v560_v34  ;;  %895 = vst [vmem:[%s1680_s28 + $0xd0] sm:$0xff] %v680_v35  ;;  %v564_v42 = vadd.f32 %v563_v40, %v1671_v14  ;;  %v684_v43 = vadd.f32 %v683_v41, %v1671_v14  ;;  %v565_v44 = vpop.f32.mrb[7].mxu0  ;;  %v685_v45 = vpop.f32.mrb[7].mxu1 }
 0x152   : > { %903 = vst [vmem:[%s1688_s17 + $0x10] sm:$0xff] %v562_v38  ;;  %927 = vst [vmem:[%s1688_s17 + $0xd0] sm:$0xff] %v682_v39  ;;  %v566_v46 = vadd.f32 %v565_v44, %v1674_v15  ;;  %v686_v47 = vadd.f32 %v685_v45, %v1674_v15 }
 0x153   : > { %872 = vst [vmem:[%s1680_s28 + $0x18] sm:$0xff] %v564_v42  ;;  %896 = vst [vmem:[%s1680_s28 + $0xd8] sm:$0xff] %v684_v43 }
 0x154   : > { %904 = vst [vmem:[%s1688_s17 + $0x18] sm:$0xff] %v566_v46  ;;  %928 = vst [vmem:[%s1688_s17 + $0xd8] sm:$0xff] %v686_v47 }
 0x156   : > { %v569_v48 = vpop.f32.mrb[8].mxu0  ;;  %v689_v49 = vpop.f32.mrb[8].mxu1 }
 0x157   : > { %v570_v50 = vadd.f32 %v569_v48, %v1671_v14  ;;  %v690_v51 = vadd.f32 %v689_v49, %v1671_v14  ;;  %v571_v52 = vpop.f32.mrb[9].mxu0  ;;  %v691_v53 = vpop.f32.mrb[9].mxu1 }
 0x158   : > { %v572_v54 = vadd.f32 %v571_v52, %v1674_v15  ;;  %v692_v55 = vadd.f32 %v691_v53, %v1674_v15  ;;  %v573_v56 = vpop.f32.mrb[10].mxu0  ;;  %v693_v57 = vpop.f32.mrb[10].mxu1 }
 0x159   : > { %873 = vst [vmem:[%s1680_s28 + $0x20] sm:$0xff] %v570_v50  ;;  %897 = vst [vmem:[%s1680_s28 + $0xe0] sm:$0xff] %v690_v51  ;;  %v574_v58 = vadd.f32 %v573_v56, %v1671_v14  ;;  %v694_v59 = vadd.f32 %v693_v57, %v1671_v14  ;;  %v575_v60 = vpop.f32.mrb[11].mxu0  ;;  %v695_v61 = vpop.f32.mrb[11].mxu1 }
 0x15a   : > { %905 = vst [vmem:[%s1688_s17 + $0x20] sm:$0xff] %v572_v54  ;;  %929 = vst [vmem:[%s1688_s17 + $0xe0] sm:$0xff] %v692_v55  ;;  %v576_v62 = vadd.f32 %v575_v60, %v1674_v15  ;;  %v696_v63 = vadd.f32 %v695_v61, %v1674_v15 }
 0x15b   : > { %874 = vst [vmem:[%s1680_s28 + $0x28] sm:$0xff] %v574_v58  ;;  %898 = vst [vmem:[%s1680_s28 + $0xe8] sm:$0xff] %v694_v59 }
 0x15c   : > { %906 = vst [vmem:[%s1688_s17 + $0x28] sm:$0xff] %v576_v62  ;;  %930 = vst [vmem:[%s1688_s17 + $0xe8] sm:$0xff] %v696_v63 }
 0x15e   : > { %v579_v1 = vpop.f32.mrb[12].mxu0  ;;  %v699_v2 = vpop.f32.mrb[12].mxu1 }
 0x15f   : > { %v580_v3 = vadd.f32 %v579_v1, %v1671_v14  ;;  %v700_v4 = vadd.f32 %v699_v2, %v1671_v14  ;;  %v581_v5 = vpop.f32.mrb[13].mxu0  ;;  %v701_v6 = vpop.f32.mrb[13].mxu1 }
 0x160   : > { %v582_v8 = vadd.f32 %v581_v5, %v1674_v15  ;;  %v702_v9 = vadd.f32 %v701_v6, %v1674_v15  ;;  %v583_v10 = vpop.f32.mrb[14].mxu0  ;;  %v703_v12 = vpop.f32.mrb[14].mxu1 }
 0x161   : > { %875 = vst [vmem:[%s1680_s28 + $0x30] sm:$0xff] %v580_v3  ;;  %899 = vst [vmem:[%s1680_s28 + $0xf0] sm:$0xff] %v700_v4  ;;  %v584_v0 = vadd.f32 %v583_v10, %v1671_v14  ;;  %v704_v16 = vadd.f32 %v703_v12, %v1671_v14  ;;  %v585_v17 = vpop.f32.mrb[15].mxu0  ;;  %v705_v18 = vpop.f32.mrb[15].mxu1 }
 0x162   : > { %907 = vst [vmem:[%s1688_s17 + $0x30] sm:$0xff] %v582_v8  ;;  %931 = vst [vmem:[%s1688_s17 + $0xf0] sm:$0xff] %v702_v9  ;;  %v586_v11 = vadd.f32 %v585_v17, %v1674_v15  ;;  %v706_v19 = vadd.f32 %v705_v18, %v1674_v15 }
 0x163   : > { %876 = vst [vmem:[%s1680_s28 + $0x38] sm:$0xff] %v584_v0  ;;  %900 = vst [vmem:[%s1680_s28 + $0xf8] sm:$0xff] %v704_v16 }
 0x164   : > { %908 = vst [vmem:[%s1688_s17 + $0x38] sm:$0xff] %v586_v11  ;;  %932 = vst [vmem:[%s1688_s17 + $0xf8] sm:$0xff] %v706_v19 }
 0x166   : > { %v589_v21 = vpop.f32.mrb[16].mxu0  ;;  %v1196_v22 = vpop.f32.mrb[16].mxu1 }
 0x167   : > { %v590_v23 = vadd.f32 %v589_v21, %v1671_v14  ;;  %v751_v24 = vadd.f32 %v1196_v22, %v1752_v20  ;;  %v591_v25 = vpop.f32.mrb[17].mxu0  ;;  %v742_v13 = vpop.f32.mrb[17].mxu1 }
 0x168   : > { %v592_v26 = vadd.f32 %v591_v25, %v1674_v15  ;;  %v743_v27 = vadd.f32 %v742_v13, %v1752_v20  ;;  %v593_v28 = vpop.f32.mrb[18].mxu0  ;;  %v1197_v29 = vpop.f32.mrb[18].mxu1 }
 0x169   : > { %877 = vst [vmem:[%s1680_s28 + $0x40] sm:$0xff] %v590_v23  ;;  %935 = vst [vmem:[%s1760_s8 + $0x10] sm:$0xff] %v751_v24  ;;  %v594_v30 = vadd.f32 %v593_v28, %v1671_v14  ;;  %v754_v31 = vadd.f32 %v1197_v29, %v1752_v20  ;;  %v595_v32 = vpop.f32.mrb[19].mxu0  ;;  %v745_v33 = vpop.f32.mrb[19].mxu1 }
 0x16a   : > { %909 = vst [vmem:[%s1688_s17 + $0x40] sm:$0xff] %v592_v26  ;;  %933 = vst [vmem:[%s1760_s8] sm:$0xff] %v743_v27  ;;  %v596_v34 = vadd.f32 %v595_v32, %v1674_v15  ;;  %v746_v35 = vadd.f32 %v745_v33, %v1752_v20 }
 0x16b   : > { %878 = vst [vmem:[%s1680_s28 + $0x48] sm:$0xff] %v594_v30  ;;  %936 = vst [vmem:[%s1760_s8 + $0x18] sm:$0xff] %v754_v31 }
 0x16c   : > { %910 = vst [vmem:[%s1688_s17 + $0x48] sm:$0xff] %v596_v34  ;;  %934 = vst [vmem:[%s1760_s8 + $0x8] sm:$0xff] %v746_v35 }
 0x16e   : > { %v599_v36 = vpop.f32.mrb[20].mxu0  ;;  %v1200_v37 = vpop.f32.mrb[20].mxu1 }
 0x16f   : > { %v600_v38 = vadd.f32 %v599_v36, %v1671_v14  ;;  %v767_v39 = vadd.f32 %v1200_v37, %v1752_v20  ;;  %v601_v40 = vpop.f32.mrb[21].mxu0  ;;  %v758_v41 = vpop.f32.mrb[21].mxu1 }
 0x170   : > { %v602_v42 = vadd.f32 %v601_v40, %v1674_v15  ;;  %v759_v43 = vadd.f32 %v758_v41, %v1752_v20  ;;  %v603_v44 = vpop.f32.mrb[22].mxu0  ;;  %v1201_v45 = vpop.f32.mrb[22].mxu1 }
 0x171   : > { %879 = vst [vmem:[%s1680_s28 + $0x50] sm:$0xff] %v600_v38  ;;  %939 = vst [vmem:[%s1760_s8 + $0x30] sm:$0xff] %v767_v39  ;;  %v604_v46 = vadd.f32 %v603_v44, %v1671_v14  ;;  %v770_v47 = vadd.f32 %v1201_v45, %v1752_v20  ;;  %v605_v48 = vpop.f32.mrb[23].mxu0  ;;  %v761_v49 = vpop.f32.mrb[23].mxu1 }
 0x172   : > { %911 = vst [vmem:[%s1688_s17 + $0x50] sm:$0xff] %v602_v42  ;;  %937 = vst [vmem:[%s1760_s8 + $0x20] sm:$0xff] %v759_v43  ;;  %v606_v50 = vadd.f32 %v605_v48, %v1674_v15  ;;  %v762_v51 = vadd.f32 %v761_v49, %v1752_v20 }
 0x173   : > { %880 = vst [vmem:[%s1680_s28 + $0x58] sm:$0xff] %v604_v46  ;;  %940 = vst [vmem:[%s1760_s8 + $0x38] sm:$0xff] %v770_v47 }
 0x174   : > { %912 = vst [vmem:[%s1688_s17 + $0x58] sm:$0xff] %v606_v50  ;;  %938 = vst [vmem:[%s1760_s8 + $0x28] sm:$0xff] %v762_v51 }
 0x176   : > { %v609_v52 = vpop.f32.mrb[24].mxu0  ;;  %v1204_v53 = vpop.f32.mrb[24].mxu1 }
 0x177   : > { %v610_v54 = vadd.f32 %v609_v52, %v1671_v14  ;;  %v783_v55 = vadd.f32 %v1204_v53, %v1752_v20  ;;  %v611_v56 = vpop.f32.mrb[25].mxu0  ;;  %v774_v57 = vpop.f32.mrb[25].mxu1 }
 0x178   : > { %v612_v58 = vadd.f32 %v611_v56, %v1674_v15  ;;  %v775_v59 = vadd.f32 %v774_v57, %v1752_v20  ;;  %v613_v60 = vpop.f32.mrb[26].mxu0  ;;  %v1205_v61 = vpop.f32.mrb[26].mxu1 }
 0x179   : > { %881 = vst [vmem:[%s1680_s28 + $0x60] sm:$0xff] %v610_v54  ;;  %943 = vst [vmem:[%s1760_s8 + $0x50] sm:$0xff] %v783_v55  ;;  %v614_v62 = vadd.f32 %v613_v60, %v1671_v14  ;;  %v786_v63 = vadd.f32 %v1205_v61, %v1752_v20  ;;  %v615_v1 = vpop.f32.mrb[27].mxu0  ;;  %v777_v2 = vpop.f32.mrb[27].mxu1 }
 0x17a   : > { %913 = vst [vmem:[%s1688_s17 + $0x60] sm:$0xff] %v612_v58  ;;  %941 = vst [vmem:[%s1760_s8 + $0x40] sm:$0xff] %v775_v59  ;;  %v616_v3 = vadd.f32 %v615_v1, %v1674_v15  ;;  %v778_v4 = vadd.f32 %v777_v2, %v1752_v20 }
 0x17b   : > { %882 = vst [vmem:[%s1680_s28 + $0x68] sm:$0xff] %v614_v62  ;;  %944 = vst [vmem:[%s1760_s8 + $0x58] sm:$0xff] %v786_v63 }
 0x17c   : > { %914 = vst [vmem:[%s1688_s17 + $0x68] sm:$0xff] %v616_v3  ;;  %942 = vst [vmem:[%s1760_s8 + $0x48] sm:$0xff] %v778_v4 }
 0x17e   : > { %v619_v5 = vpop.f32.mrb[28].mxu0  ;;  %v1208_v6 = vpop.f32.mrb[28].mxu1 }
 0x17f   : > { %v620_v7 = vadd.f32 %v619_v5, %v1671_v14  ;;  %v799_v8 = vadd.f32 %v1208_v6, %v1752_v20  ;;  %v621_v9 = vpop.f32.mrb[29].mxu0  ;;  %v790_v10 = vpop.f32.mrb[29].mxu1 }
 0x180   : > { %v622_v12 = vadd.f32 %v621_v9, %v1674_v15  ;;  %v791_v0 = vadd.f32 %v790_v10, %v1752_v20  ;;  %v623_v16 = vpop.f32.mrb[30].mxu0  ;;  %v1209_v17 = vpop.f32.mrb[30].mxu1 }
 0x181   : > { %883 = vst [vmem:[%s1680_s28 + $0x70] sm:$0xff] %v620_v7  ;;  %947 = vst [vmem:[%s1760_s8 + $0x70] sm:$0xff] %v799_v8  ;;  %v624_v18 = vadd.f32 %v623_v16, %v1671_v14  ;;  %v802_v11 = vadd.f32 %v1209_v17, %v1752_v20  ;;  %v625_v19 = vpop.f32.mrb[31].mxu0  ;;  %v793_v21 = vpop.f32.mrb[31].mxu1 }
 0x182   : > { %915 = vst [vmem:[%s1688_s17 + $0x70] sm:$0xff] %v622_v12  ;;  %945 = vst [vmem:[%s1760_s8 + $0x60] sm:$0xff] %v791_v0  ;;  %v626_v22 = vadd.f32 %v625_v19, %v1674_v15  ;;  %v794_v23 = vadd.f32 %v793_v21, %v1752_v20 }
 0x183   : > { %884 = vst [vmem:[%s1680_s28 + $0x78] sm:$0xff] %v624_v18  ;;  %948 = vst [vmem:[%s1760_s8 + $0x78] sm:$0xff] %v802_v11 }
 0x184   : > { %916 = vst [vmem:[%s1688_s17 + $0x78] sm:$0xff] %v626_v22  ;;  %946 = vst [vmem:[%s1760_s8 + $0x68] sm:$0xff] %v794_v23 }
 0x186   : > { %v629_v24 = vpop.f32.mrb[32].mxu0  ;;  %v1212_v25 = vpop.f32.mrb[32].mxu1 }
 0x187   : > { %v630_v13 = vadd.f32 %v629_v24, %v1671_v14  ;;  %v815_v26 = vadd.f32 %v1212_v25, %v1752_v20  ;;  %v631_v27 = vpop.f32.mrb[33].mxu0  ;;  %v806_v28 = vpop.f32.mrb[33].mxu1 }
 0x188   : > { %v632_v29 = vadd.f32 %v631_v27, %v1674_v15  ;;  %v807_v30 = vadd.f32 %v806_v28, %v1752_v20  ;;  %v633_v31 = vpop.f32.mrb[34].mxu0  ;;  %v1213_v32 = vpop.f32.mrb[34].mxu1 }
 0x189   : > { %885 = vst [vmem:[%s1680_s28 + $0x80] sm:$0xff] %v630_v13  ;;  %951 = vst [vmem:[%s1760_s8 + $0x90] sm:$0xff] %v815_v26  ;;  %v634_v33 = vadd.f32 %v633_v31, %v1671_v14  ;;  %v818_v34 = vadd.f32 %v1213_v32, %v1752_v20  ;;  %v635_v35 = vpop.f32.mrb[35].mxu0  ;;  %v809_v36 = vpop.f32.mrb[35].mxu1 }
 0x18a   : > { %917 = vst [vmem:[%s1688_s17 + $0x80] sm:$0xff] %v632_v29  ;;  %949 = vst [vmem:[%s1760_s8 + $0x80] sm:$0xff] %v807_v30  ;;  %v636_v37 = vadd.f32 %v635_v35, %v1674_v15  ;;  %v810_v38 = vadd.f32 %v809_v36, %v1752_v20 }
 0x18b   : > { %886 = vst [vmem:[%s1680_s28 + $0x88] sm:$0xff] %v634_v33  ;;  %952 = vst [vmem:[%s1760_s8 + $0x98] sm:$0xff] %v818_v34 }
 0x18c   : > { %918 = vst [vmem:[%s1688_s17 + $0x88] sm:$0xff] %v636_v37  ;;  %950 = vst [vmem:[%s1760_s8 + $0x88] sm:$0xff] %v810_v38 }
 0x18e   : > { %v639_v39 = vpop.f32.mrb[36].mxu0  ;;  %v1216_v40 = vpop.f32.mrb[36].mxu1 }
 0x18f   : > { %v640_v41 = vadd.f32 %v639_v39, %v1671_v14  ;;  %v831_v42 = vadd.f32 %v1216_v40, %v1752_v20  ;;  %v641_v43 = vpop.f32.mrb[37].mxu0  ;;  %v822_v44 = vpop.f32.mrb[37].mxu1 }
 0x190   : > { %v642_v45 = vadd.f32 %v641_v43, %v1674_v15  ;;  %v823_v46 = vadd.f32 %v822_v44, %v1752_v20  ;;  %v643_v47 = vpop.f32.mrb[38].mxu0  ;;  %v1217_v48 = vpop.f32.mrb[38].mxu1 }
 0x191   : > { %887 = vst [vmem:[%s1680_s28 + $0x90] sm:$0xff] %v640_v41  ;;  %955 = vst [vmem:[%s1760_s8 + $0xb0] sm:$0xff] %v831_v42  ;;  %v644_v49 = vadd.f32 %v643_v47, %v1671_v14  ;;  %v834_v50 = vadd.f32 %v1217_v48, %v1752_v20  ;;  %v645_v51 = vpop.f32.mrb[39].mxu0  ;;  %v825_v52 = vpop.f32.mrb[39].mxu1 }
 0x192   : > { %919 = vst [vmem:[%s1688_s17 + $0x90] sm:$0xff] %v642_v45  ;;  %953 = vst [vmem:[%s1760_s8 + $0xa0] sm:$0xff] %v823_v46  ;;  %v646_v53 = vadd.f32 %v645_v51, %v1674_v15  ;;  %v826_v54 = vadd.f32 %v825_v52, %v1752_v20 }
 0x193   : > { %888 = vst [vmem:[%s1680_s28 + $0x98] sm:$0xff] %v644_v49  ;;  %956 = vst [vmem:[%s1760_s8 + $0xb8] sm:$0xff] %v834_v50 }
 0x194   : > { %920 = vst [vmem:[%s1688_s17 + $0x98] sm:$0xff] %v646_v53  ;;  %954 = vst [vmem:[%s1760_s8 + $0xa8] sm:$0xff] %v826_v54 }
 0x196   : > { %v649_v55 = vpop.f32.mrb[40].mxu0  ;;  %v1220_v56 = vpop.f32.mrb[40].mxu1 }
 0x197   : > { %v650_v57 = vadd.f32 %v649_v55, %v1671_v14  ;;  %v847_v58 = vadd.f32 %v1220_v56, %v1752_v20  ;;  %v651_v59 = vpop.f32.mrb[41].mxu0  ;;  %v838_v60 = vpop.f32.mrb[41].mxu1 }
 0x198   : > { %v652_v61 = vadd.f32 %v651_v59, %v1674_v15  ;;  %v839_v62 = vadd.f32 %v838_v60, %v1752_v20  ;;  %v653_v63 = vpop.f32.mrb[42].mxu0  ;;  %v1221_v1 = vpop.f32.mrb[42].mxu1 }
 0x199   : > { %889 = vst [vmem:[%s1680_s28 + $0xa0] sm:$0xff] %v650_v57  ;;  %959 = vst [vmem:[%s1760_s8 + $0xd0] sm:$0xff] %v847_v58  ;;  %v654_v2 = vadd.f32 %v653_v63, %v1671_v14  ;;  %v850_v3 = vadd.f32 %v1221_v1, %v1752_v20  ;;  %v655_v4 = vpop.f32.mrb[43].mxu0  ;;  %v841_v5 = vpop.f32.mrb[43].mxu1 }
 0x19a   : > { %921 = vst [vmem:[%s1688_s17 + $0xa0] sm:$0xff] %v652_v61  ;;  %957 = vst [vmem:[%s1760_s8 + $0xc0] sm:$0xff] %v839_v62  ;;  %v656_v6 = vadd.f32 %v655_v4, %v1674_v15  ;;  %v842_v7 = vadd.f32 %v841_v5, %v1752_v20 }
 0x19b   : > { %890 = vst [vmem:[%s1680_s28 + $0xa8] sm:$0xff] %v654_v2  ;;  %960 = vst [vmem:[%s1760_s8 + $0xd8] sm:$0xff] %v850_v3 }
 0x19c   : > { %922 = vst [vmem:[%s1688_s17 + $0xa8] sm:$0xff] %v656_v6  ;;  %958 = vst [vmem:[%s1760_s8 + $0xc8] sm:$0xff] %v842_v7 }
 0x19e   : > { %v659_v8 = vpop.f32.mrb[44].mxu0  ;;  %v1224_v9 = vpop.f32.mrb[44].mxu1 }
 0x19f   : > { %v660_v10 = vadd.f32 %v659_v8, %v1671_v14  ;;  %v863_v12 = vadd.f32 %v1224_v9, %v1752_v20  ;;  %v661_v0 = vpop.f32.mrb[45].mxu0  ;;  %v854_v16 = vpop.f32.mrb[45].mxu1 }
 0x1a0   : > { %v662_v17 = vadd.f32 %v661_v0, %v1674_v15  ;;  %v855_v18 = vadd.f32 %v854_v16, %v1752_v20  ;;  %v663_v11 = vpop.f32.mrb[46].mxu0  ;;  %v1225_v19 = vpop.f32.mrb[46].mxu1 }
 0x1a1   : > { %891 = vst [vmem:[%s1680_s28 + $0xb0] sm:$0xff] %v660_v10  ;;  %963 = vst [vmem:[%s1760_s8 + $0xf0] sm:$0xff] %v863_v12  ;;  %v664_v21 = vadd.f32 %v663_v11, %v1671_v14  ;;  %v866_v22 = vadd.f32 %v1225_v19, %v1752_v20  ;;  %v665_v23 = vpop.f32.mrb[47].mxu0  ;;  %v857_v24 = vpop.f32.mrb[47].mxu1 }
 0x1a2   : > { %923 = vst [vmem:[%s1688_s17 + $0xb0] sm:$0xff] %v662_v17  ;;  %961 = vst [vmem:[%s1760_s8 + $0xe0] sm:$0xff] %v855_v18  ;;  %v666_v25 = vadd.f32 %v665_v23, %v1674_v15  ;;  %v858_v13 = vadd.f32 %v857_v24, %v1752_v20 }
 0x1a3   : > { %892 = vst [vmem:[%s1680_s28 + $0xb8] sm:$0xff] %v664_v21  ;;  %964 = vst [vmem:[%s1760_s8 + $0xf8] sm:$0xff] %v866_v22 }
 0x1a4   : > { %924 = vst [vmem:[%s1688_s17 + $0xb8] sm:$0xff] %v666_v25  ;;  %962 = vst [vmem:[%s1760_s8 + $0xe8] sm:$0xff] %v858_v13 }
 0x1a5 PF: > { %p17_p6 = scmp.ge.s32.totalorder %s1511_s29, 4   ;;  %s1921_s18 = smov %s1417_s19 }
 0x1a6   : > { %s1922_s19 = smov %s1421_s20  ;;  %s1923_s20 = smov %s1537_s26 }
 0x1a7   : > { %s1924_s21 = smov %s1511_s29  ;;  %19 = sbr.rel (!%p17_p6) target bundleno = 4 (0x4), region = 100 }
 0x1ae   :  { %1021 = vsyncpa [#allocation3], 1 }
 0x1af   :  { %1023 = vsyncpa [#allocation3 + $0x1], 1 }
 0x1b0   :  { %1024 = vsyncpa [#allocation5], 1 }

</bundles_post_ra>
